<compile_context>
chip_gen: v7x
topology: tpu7x:2x2x1
jax: 0.10.0
libtpu: 0.0.40
codegen_flags: <defaults>
</compile_context>

<pallas_src>
import jax
import jax.numpy as jnp
from jax.experimental import pallas as pl
from jax.experimental.pallas import tpu as pltpu

_MIB = 1024 * 1024


# ----------------------------- kernels ------------------------------------- #

def retrieval_prologue_kernel(retr_ref, wp_ref, bp_ref, wg2_ref, bg_ref,
                              pooled_out, beff_out):
    # retr_ref: [R, Dr] (batch squeezed); wp: [Dr, H]; bp/bg: [1, H]; wg2: [H, H]
    r = retr_ref[...].astype(jnp.float32)
    rmean = jnp.mean(r, axis=0, keepdims=True)                              # [1, Dr]
    pooled = (jnp.dot(rmean, wp_ref[...].astype(jnp.float32),
                      preferred_element_type=jnp.float32)
              + bp_ref[...].astype(jnp.float32))                            # [1, H]
    beff = (jnp.dot(pooled, wg2_ref[...].astype(jnp.float32),
                    preferred_element_type=jnp.float32)
            + bg_ref[...].astype(jnp.float32))                              # [1, H]
    pooled_out[...] = pooled
    beff_out[...] = beff


def gated_fusion_kernel(enc_ref, wg1_ref, beff_ref, pooled_ref, out_ref):
    # enc_ref: [tS, H] bf16; wg1: [H, tN] bf16; beff/pooled: [1, tN] f32; out: [tS, tN] bf16
    enc = enc_ref[...]
    logits = (jnp.dot(enc, wg1_ref[...], preferred_element_type=jnp.float32)
              + beff_ref[...])                                              # [tS, tN] f32
    gate = jax.nn.sigmoid(logits)

    H = enc_ref.shape[-1]
    tN = out_ref.shape[-1]
    if tN == H:                       # static (trace-time) branch: no column tiling
        enc_cols = enc
    else:                             # large-H path: pick this n-tile's columns
        col0 = pl.multiple_of(pl.program_id(2) * tN, tN)
        enc_cols = enc_ref[:, pl.ds(col0, tN)]

    pooled = pooled_ref[...]          # [1, tN] f32
    # Blend in f32: fused = enc*gate + pooled*(1-gate) == pooled + gate*(enc-pooled)
    out_ref[...] = (pooled + gate * (enc_cols.astype(jnp.float32) - pooled)
                    ).astype(out_ref.dtype)


# ----------------------------- tiling helpers ------------------------------ #

def _vmem_budget_bytes():
    """Scoped-VMEM request: ~65% of per-core physical VMEM, capped.
    v5e/v6e (128 MiB) -> ~83 MiB; v7x (64 MiB) -> ~41 MiB (well under 48 MiB)."""
    try:
        cap = pltpu.get_tpu_info().vmem_capacity_bytes
    except Exception:
        cap = 64 * _MIB          # unknown chip: assume the small (v7x-class) VMEM
    return min(int(cap * 0.65), 88 * _MIB)


def _pick_col_tile(H, tile_budget):
    """Output-column (= Wg1 column) tile. Full H unless the resident bf16 weight
    block would eat more than ~1/3 of the tile budget (large d_model on v7x)."""
    if H * H * 2 <= tile_budget // 3:
        return H
    for cand in (1024, 512, 256):
        if H % cand == 0 and H * cand * 2 <= tile_budget // 3:
            return cand
    return H


def _pick_seq_tile(S, H, tN, tile_budget):
    """Largest sequence tile (1024 first — amortizes per-step pipeline overhead)
    whose double-buffered working set fits the tile budget."""
    def footprint(ts):
        return (2 * ts * H * 2         # enc tile, bf16, double-buffered
                + 2 * ts * tN * 2      # out tile, bf16, double-buffered
                + 2 * H * tN * 2       # Wg1 block (conservative x2)
                + 4 * 2 * tN * 4)      # beff + pooled, f32, double-buffered
    for cand in (1024, 512, 256, 128):
        if S % cand == 0 and footprint(cand) <= tile_budget:
            return cand
    return S                           # full-extent block (always legal)


# ----------------------------- wrapper -------------------------------------- #

def retrieval_fusion(encoder_hidden, retrieval_embeddings, wp, bp, wg, bg):
    """encoder_hidden: [B, S, H]; retrieval_embeddings: [B, R, Dr].
    wp: [Dr, H], bp: [H], wg: [2H, H], bg: [H]  (weights stored as (in, out),
    i.e. transpose of torch nn.Linear.weight).

    Layout guidance: pad H to a multiple of 256 (v6e/v7x MXU is 256-wide; 128
    suffices on v5e). NOTE: zero-padded weight columns give sigmoid(0)=0.5 gates,
    so padded output columns are NOT zero — callers must slice them off.
    Output is bf16 (enc/out are streamed in bf16; blend math stays f32 in-kernel).
    """
    B, S, H = encoder_hidden.shape
    _, R, Dr = retrieval_embeddings.shape
    assert wg.shape == (2 * H, H)

    # One-time weight prep (casts happen once at load, not per grid step).
    wg1 = wg[:H, :].astype(jnp.bfloat16)      # acts on encoder hidden states
    wg2 = wg[H:, :]                           # acts on pooled retrieval context (f32 path)
    bp2 = bp.reshape(1, H)
    bg2 = bg.reshape(1, H)

    # ---- prologue: per-batch pooled retrieval context + folded gate bias ----
    # Gridded over B so only one [R, Dr] slab is VMEM-resident at a time; all
    # casts happen inside (no host-side astype round-trips through HBM).
    pooled, beff = pl.pallas_call(
        retrieval_prologue_kernel,
        out_shape=(jax.ShapeDtypeStruct((B, 1, H), jnp.float32),
                   jax.ShapeDtypeStruct((B, 1, H), jnp.float32)),
        grid_spec=pltpu.PrefetchScalarGridSpec(
            num_scalar_prefetch=0,
            grid=(B,),
            in_specs=[
                pl.BlockSpec((None, R, Dr), lambda b: (b, 0, 0)),
                pl.BlockSpec((Dr, H), lambda b: (0, 0)),
                pl.BlockSpec((1, H), lambda b: (0, 0)),
                pl.BlockSpec((H, H), lambda b: (0, 0)),
                pl.BlockSpec((1, H), lambda b: (0, 0)),
            ],
            out_specs=(
                pl.BlockSpec((None, 1, H), lambda b: (b, 0, 0)),
                pl.BlockSpec((None, 1, H), lambda b: (b, 0, 0)),
            )),
        compiler_params=pltpu.CompilerParams(dimension_semantics=("parallel",)),
    )(retrieval_embeddings, wp, bp2, wg2, bg2)

    # ---- main kernel: bf16-streamed, S-tiled (and column-tiled for huge H) ----
    enc_bf16 = encoder_hidden.astype(jnp.bfloat16)

    budget = _vmem_budget_bytes()
    tile_budget = (budget * 4) // 5            # leave headroom for compiler scratch
    tN = _pick_col_tile(H, tile_budget)
    tS = _pick_seq_tile(S, H, tN, tile_budget)
    assert S % tS == 0, "sequence tile must divide S (no tail-drop)"
    assert H % tN == 0, "column tile must divide H"
    num_s, num_n = S // tS, H // tN

    def call(single_buffer_weight):
        w_kwargs = {}
        if single_buffer_weight:
            # Grid-constant weight never needs the second pipeline buffer.
            w_kwargs["pipeline_mode"] = pl.Buffered(buffer_count=1)
        grid_spec = pltpu.PrefetchScalarGridSpec(
            num_scalar_prefetch=0,
            # S-tile axis first so megacore (v7x) shards the large parallel axis.
            grid=(num_s, B, num_n),
            in_specs=[
                pl.BlockSpec((None, tS, H), lambda s, b, n: (b, s, 0)),   # enc tile (n-invariant)
                pl.BlockSpec((H, tN), lambda s, b, n: (0, n), **w_kwargs),  # Wg1 bf16
                pl.BlockSpec((None, 1, tN), lambda s, b, n: (b, 0, n)),   # b_eff
                pl.BlockSpec((None, 1, tN), lambda s, b, n: (b, 0, n)),   # pooled
            ],
            out_specs=pl.BlockSpec((None, tS, tN), lambda s, b, n: (b, s, n)),
        )
        # NOTE: input_output_aliases={0: 0} would save the output HBM allocation
        # (footprint only, not bandwidth); left off to avoid a forced copy when
        # the caller cannot donate encoder_hidden.
        return pl.pallas_call(
            gated_fusion_kernel,
            out_shape=jax.ShapeDtypeStruct((B, S, H), jnp.bfloat16),
            grid_spec=grid_spec,
            compiler_params=pltpu.CompilerParams(
                dimension_semantics=("parallel", "parallel", "arbitrary"),
                vmem_limit_bytes=budget),
        )(enc_bf16, wg1, beff, pooled)

    if num_n == 1:
        # Weight index_map is constant over the whole grid -> single-buffer it;
        # fall back to default double buffering if this JAX rejects Buffered(1).
        try:
            return call(True)
        except Exception:
            return call(False)
    return call(False)


def retrieval_fusion_ref(encoder_hidden, retrieval_embeddings, wp, bp, wg, bg):
    """Pure-JAX f32 reference mirroring the PyTorch forward (concat fusion)."""
    B, S, H = encoder_hidden.shape
    proj = retrieval_embeddings @ wp + bp                                 # [B, R, H]
    pooled = jnp.mean(proj, axis=1, keepdims=True)                        # [B, 1, H]
    pooled_exp = jnp.broadcast_to(pooled, (B, S, H))
    combined = jnp.concatenate([encoder_hidden, pooled_exp], axis=-1)     # [B, S, 2H]
    gate = jax.nn.sigmoid(combined @ wg + bg)                             # [B, S, H]
    return encoder_hidden * gate + pooled_exp * (1.0 - gate)


if __name__ == "__main__":
    # Small shapes consistent with the module's forward semantics
    # (H kept at a 128 multiple for lane-dense stores).
    B, S, H = 2, 16, 128        # batch, encoder seq len, d_model
    R, Dr = 4, 384              # num retrieval passages, retrieval_dim

    key = jax.random.PRNGKey(0)
    k_enc, k_ret, k_wp, k_bp, k_wg, k_bg = jax.random.split(key, 6)

    encoder_hidden = jax.random.normal(k_enc, (B, S, H), dtype=jnp.float32)
    retrieval_emb = jax.random.normal(k_ret, (B, R, Dr), dtype=jnp.float32)

    # Deterministic parameter init, stored as (in_features, out_features).
    wp = jax.random.normal(k_wp, (Dr, H), dtype=jnp.float32) * 0.05
    bp = jax.random.normal(k_bp, (H,), dtype=jnp.float32) * 0.05
    wg = jax.random.normal(k_wg, (2 * H, H), dtype=jnp.float32) * 0.05
    bg = jax.random.normal(k_bg, (H,), dtype=jnp.float32) * 0.05

    out = retrieval_fusion(encoder_hidden, retrieval_emb, wp, bp, wg, bg)
    out = jax.block_until_ready(out)

    ref = retrieval_fusion_ref(encoder_hidden, retrieval_emb, wp, bp, wg, bg)
    assert out.shape == (B, S, H)
    assert out.dtype == jnp.bfloat16
    # bf16 streaming of enc/Wg1/out loosens tolerance vs the pure-f32 reference.
    assert jnp.allclose(out.astype(jnp.float32), ref, atol=3e-2, rtol=3e-2), \
        "mismatch vs reference"

    print("KERNEL_OK")
</pallas_src>

<mosaic_0001>
module attributes {stable_mosaic.version = 11 : i64} {
  func.func @retrieval_prologue_kernel(%arg0: i32, %arg1: memref<1x4x384xf32, #tpu.memory_space<vmem>>, %arg2: memref<384x128xf32, #tpu.memory_space<vmem>>, %arg3: memref<1x128xf32, #tpu.memory_space<vmem>>, %arg4: memref<128x128xf32, #tpu.memory_space<vmem>>, %arg5: memref<1x128xf32, #tpu.memory_space<vmem>>, %arg6: memref<1x1x128xf32, #tpu.memory_space<vmem>>, %arg7: memref<1x1x128xf32, #tpu.memory_space<vmem>>) attributes {dimension_semantics = [#tpu.dimension_semantics<parallel>], iteration_bounds = array<i64: 2>, scalar_prefetch = 0 : i64, scratch_operands = 0 : i64, tpu.core_type = #tpu.core_type<tc>, window_params = [{transform_indices = @transform_0, window_bounds = array<i64: 1, 4, 384>}, {pipeline_mode = #tpu.pipeline_mode<synchronous>, transform_indices = @transform_1, window_bounds = array<i64: 384, 128>}, {pipeline_mode = #tpu.pipeline_mode<synchronous>, transform_indices = @transform_2, window_bounds = array<i64: 1, 128>}, {pipeline_mode = #tpu.pipeline_mode<synchronous>, transform_indices = @transform_3, window_bounds = array<i64: 128, 128>}, {pipeline_mode = #tpu.pipeline_mode<synchronous>, transform_indices = @transform_4, window_bounds = array<i64: 1, 128>}, {transform_indices = @transform_5, window_bounds = array<i64: 1, 1, 128>}, {transform_indices = @transform_6, window_bounds = array<i64: 1, 1, 128>}]} {
    %c0 = arith.constant 0 : index
    %c0_0 = arith.constant 0 : index
    %c0_1 = arith.constant 0 : index
    %0 = vector.load %arg1[%c0, %c0_0, %c0_1] : memref<1x4x384xf32, #tpu.memory_space<vmem>>, vector<1x4x384xf32>
    %1 = vector.shape_cast %0 : vector<1x4x384xf32> to vector<4x384xf32>
    %cst = arith.constant dense<0.000000e+00> : vector<384xf32>
    %2 = vector.multi_reduction <add>, %1, %cst [0] : vector<4x384xf32> to vector<384xf32>
    %3 = vector.shape_cast %2 : vector<384xf32> to vector<1x384xf32>
    %cst_2 = arith.constant 4.000000e+00 : f32
    %4 = vector.broadcast %cst_2 : f32 to vector<1x384xf32>
    %5 = arith.divf %3, %4 : vector<1x384xf32>
    %c0_3 = arith.constant 0 : index
    %c0_4 = arith.constant 0 : index
    %6 = vector.load %arg2[%c0_3, %c0_4] : memref<384x128xf32, #tpu.memory_space<vmem>>, vector<384x128xf32>
    %cst_5 = arith.constant dense<0.000000e+00> : vector<1x128xf32>
    %7 = tpu.matmul %5, %6, %cst_5 {dimension_numbers = #tpu.dot_dimension_numbers<[1], [0], [0], [1], [0, 0, 1, 1], [], []>} : vector<1x384xf32>, vector<384x128xf32>, vector<1x128xf32> -> vector<1x128xf32>
    %c0_6 = arith.constant 0 : index
    %c0_7 = arith.constant 0 : index
    %8 = vector.load %arg3[%c0_6, %c0_7] : memref<1x128xf32, #tpu.memory_space<vmem>>, vector<1x128xf32>
    %9 = arith.addf %7, %8 : vector<1x128xf32>
    %c0_8 = arith.constant 0 : index
    %c0_9 = arith.constant 0 : index
    %10 = vector.load %arg4[%c0_8, %c0_9] : memref<128x128xf32, #tpu.memory_space<vmem>>, vector<128x128xf32>
    %cst_10 = arith.constant dense<0.000000e+00> : vector<1x128xf32>
    %11 = tpu.matmul %9, %10, %cst_10 {dimension_numbers = #tpu.dot_dimension_numbers<[1], [0], [0], [1], [0, 0, 1, 1], [], []>} : vector<1x128xf32>, vector<128x128xf32>, vector<1x128xf32> -> vector<1x128xf32>
    %c0_11 = arith.constant 0 : index
    %c0_12 = arith.constant 0 : index
    %12 = vector.load %arg5[%c0_11, %c0_12] : memref<1x128xf32, #tpu.memory_space<vmem>>, vector<1x128xf32>
    %13 = arith.addf %11, %12 : vector<1x128xf32>
    %c0_13 = arith.constant 0 : index
    %c0_14 = arith.constant 0 : index
    %c0_15 = arith.constant 0 : index
    %14 = vector.load %arg6[%c0_13, %c0_14, %c0_15] : memref<1x1x128xf32, #tpu.memory_space<vmem>>, vector<1x1x128xf32>
    %15 = vector.shape_cast %14 : vector<1x1x128xf32> to vector<1x128xf32>
    %16 = vector.shape_cast %9 : vector<1x128xf32> to vector<1x1x128xf32>
    tpu.vector_store %arg6[%c0_13, %c0_14, %c0_15], %16 {strides = array<i32>} : memref<1x1x128xf32, #tpu.memory_space<vmem>>, vector<1x1x128xf32>,
    %c0_16 = arith.constant 0 : index
    %c0_17 = arith.constant 0 : index
    %c0_18 = arith.constant 0 : index
    %17 = vector.load %arg7[%c0_16, %c0_17, %c0_18] : memref<1x1x128xf32, #tpu.memory_space<vmem>>, vector<1x1x128xf32>
    %18 = vector.shape_cast %17 : vector<1x1x128xf32> to vector<1x128xf32>
    %19 = vector.shape_cast %13 : vector<1x128xf32> to vector<1x1x128xf32>
    tpu.vector_store %arg7[%c0_16, %c0_17, %c0_18], %19 {strides = array<i32>} : memref<1x1x128xf32, #tpu.memory_space<vmem>>, vector<1x1x128xf32>,
    return
  }
  func.func @transform_0(%arg0: i32) -> (i32, i32, i32) {
    %c0_i32 = arith.constant 0 : i32
    %c0_i32_0 = arith.constant 0 : i32
    %c0_i32_1 = arith.constant 0 : i32
    return %arg0, %c0_i32, %c0_i32_0 : i32, i32, i32
  }
  func.func @transform_1(%arg0: i32) -> (i32, i32) {
    %c0_i32 = arith.constant 0 : i32
    %c0_i32_0 = arith.constant 0 : i32
    %c0_i32_1 = arith.constant 0 : i32
    return %c0_i32, %c0_i32_0 : i32, i32
  }
  func.func @transform_2(%arg0: i32) -> (i32, i32) {
    %c0_i32 = arith.constant 0 : i32
    %c0_i32_0 = arith.constant 0 : i32
    %c0_i32_1 = arith.constant 0 : i32
    return %c0_i32, %c0_i32_0 : i32, i32
  }
  func.func @transform_3(%arg0: i32) -> (i32, i32) {
    %c0_i32 = arith.constant 0 : i32
    %c0_i32_0 = arith.constant 0 : i32
    %c0_i32_1 = arith.constant 0 : i32
    return %c0_i32, %c0_i32_0 : i32, i32
  }
  func.func @transform_4(%arg0: i32) -> (i32, i32) {
    %c0_i32 = arith.constant 0 : i32
    %c0_i32_0 = arith.constant 0 : i32
    %c0_i32_1 = arith.constant 0 : i32
    return %c0_i32, %c0_i32_0 : i32, i32
  }
  func.func @transform_5(%arg0: i32) -> (i32, i32, i32) {
    %c0_i32 = arith.constant 0 : i32
    %c0_i32_0 = arith.constant 0 : i32
    %c0_i32_1 = arith.constant 0 : i32
    return %arg0, %c0_i32, %c0_i32_0 : i32, i32, i32
  }
  func.func @transform_6(%arg0: i32) -> (i32, i32, i32) {
    %c0_i32 = arith.constant 0 : i32
    %c0_i32_0 = arith.constant 0 : i32
    %c0_i32_1 = arith.constant 0 : i32
    return %arg0, %c0_i32, %c0_i32_0 : i32, i32, i32
  }
}

</mosaic_0001>

<bundles_post_ra>
// kernel: tpu_custom_call.1
= control target key start
LH: loop header
LB: loop body
LE: loop exit
PB: predicated region body
PF: predicated region fallthrough
CT: control target
= control target key end

     0   :  { %12 = vsyncpa [#allocation3], 0  ;;  %s1597_s0 = inlined_call_operand.hbm [shape: f32[2,4,384], index: 0, kind: input, shape index: {}]   ;;  %s1598_s1 = inlined_call_operand.hbm [shape: f32[384,128], index: 1, kind: input, shape index: {}]   ;;  %s1599_s2 = inlined_call_operand.vmem [shape: f32[1,128], index: 2, kind: input, shape index: {}]   ;;  %s1600_s3 = inlined_call_operand.hbm [shape: f32[128,128], index: 3, kind: input, shape index: {}]   ;;  %s1601_s4 = inlined_call_operand.vmem [shape: f32[1,128], index: 4, kind: input, shape index: {}]   ;;  %s1602_s5 = inlined_call_operand.hbm [shape: f32[2,1,128], index: 5, kind: output, shape index: {0}]   ;;  %s1603_s6 = inlined_call_operand.hbm [shape: f32[2,1,128], index: 6, kind: output, shape index: {1}]  }
   0x1   :  { %14 = vsyncpa [#allocation3 + $0x1], 0 }
   0x2   :  { %15 = vsyncpa [#allocation6], 0 }
   0x3   :  { %16 = vsyncpa [#allocation4], 0 }
   0x4   :  { %18 = vsyncpa [#allocation4 + $0x1], 0 }
   0x5   :  { %19 = vsyncpa [#allocation10], 0 }
   0x6   :  { %21 = vsyncpa [#allocation10 + $0x1], 0  ;;  %s1306_s21 = smov 0   ;;  %s1308_s22 = smov 0  }
   0x7   :  { %s1310_s23 = smov 0   ;;  %s1312_s24 = smov 0  }
   0x8 LB: > { %s1327_s25 = sadd.s32 4294967295, %s1259_s24   ;;  %s758_s26 = sadd.s32 4294967294, %s1259_s24   ;;  %s1259_s24 = sphi %s1312_s24, %s1623_s24   ;;  %s1255_s23 = sphi %s1310_s23, %s1622_s23   ;;  %s1251_s22 = sphi %s1308_s22, %s1621_s22   ;;  %s1247_s21 = sphi %s1306_s21, %s1620_s21  }
   0x9   : > { %p47_p0 = scmp.ne.s32.totalorder %s1251_s22, %s1247_s21  ;;  %p1604_p1 = scmp.eq.s32.totalorder %s1327_s25, 0 }
   0xa   : > { %p161_p3 = scmp.eq.s32.totalorder %s758_s26, 1  ;;  %p759_p5 = scmp.ge.s32.totalorder %s1259_s24, 1 }
   0xb   : > { %p1336_p4 = por %p1604_p1, %p47_p0  ;;  %p194_p7 = scmp.lt.s32.totalorder %s1259_s24, 3 }
   0xc   : > { %p1341_p6 = por %p161_p3, %p47_p0  ;;  %s1261_s30 = smov [#allocation5]  }
   0xd   : > { %s1607_s27 = scalar_select %p1336_p4, 1, 0 }
   0xe   : > { %s1608_s28 = scalar_select %p1341_p6, 1, 0 }
   0xf   : > { %p1346_p8 = pnand %p759_p5, %p194_p7  ;;  %s206_s7 = sshll.u32 %s1261_s30, 4  ;;  %s1350_s7 = int_to_ptr.vmem [resolvable:$true] %s206_s7 }
  0x10   : > { %s1262_s9 = smov [#allocation7]   ;;  %s1071_s13 = scalar_lea.hbm %s1598_s1, 6144 }
  0x11   : > { %p1007_p9 = pneg %p1346_p8  ;;  %s222_s10 = sshll.u32 %s1262_s9, 4  ;;  %s1361_s10 = int_to_ptr.vmem [resolvable:$true] %s222_s10 }
  0x12   : > { %p1072_p12 = scmp.ne.s32.totalorder %s1598_s1, %s1071_s13  ;;  %p1078_p5 = scmp.lt.u32.totalorder %s1071_s13, %s1598_s1 }
  0x13   : > { %p1357_p11 = pnand %p1007_p9, %p1604_p1 }
  0x15   : > { %p1073_p13 = pneg %p1357_p11 }
  0x17   : > { %p1074_p0 = pnand %p1073_p13, %p1072_p12 }
  0x19   : > { %p1075_p3 = pneg %p1074_p0 }
  0x1b   : > { %p1080_p7 = pnand %p1078_p5, %p1075_p3 }
  0x1d   : > { %1083 = shalt.err (!%p1080_p7)
}
  0x1e   : > { %s1084_s18 = scalar_lea.vmem %s1350_s7, 6144  ;;  %p1092_p2 = scmp.lt.s32.totalorder %s1350_s7, %s1350_s7 }
  0x1f   : > { %p1085_p9 = scmp.ne.s32.totalorder %s1350_s7, %s1084_s18  ;;  %p1093_p12 = scmp.lt.s32.totalorder %s1084_s18, %s1084_s18 }
  0x21   : > { %p1087_p10 = pnand %p1085_p9, %p1073_p13  ;;  %p1094_p0 = por %p1093_p12, %p1092_p2 }
  0x23   : > { %p1088_p1 = pneg %p1087_p10 }
  0x25   : > { %p1095_p6 = pnand %p1094_p0, %p1088_p1 }
  0x27   : > { %1098 = shalt.err (!%p1095_p6)
}
  0x28   : > { %s1263_s19 = smov 128   ;;  %s1264_s20 = smov 8  }
  0x29   : > { %1010 = dma.hbm_to_vmem [thread:$0]  (!%p1357_p11), %s1598_s1, 6144, %s1350_s7, [#allocation6], %s1263_s19, %s1263_s19, %s1264_s20  }
  0x2a   : > { %s1099_s12 = scalar_lea.hbm %s1600_s3, 2048 }
  0x2b   : > { %p1100_p2 = scmp.ne.s32.totalorder %s1600_s3, %s1099_s12  ;;  %p1106_p10 = scmp.lt.u32.totalorder %s1099_s12, %s1600_s3 }
  0x2d   : > { %p1102_p1 = pnand %p1100_p2, %p1073_p13 }
  0x2f   : > { %p1103_p6 = pneg %p1102_p1 }
  0x31   : > { %p1108_p3 = pnand %p1106_p10, %p1103_p6 }
  0x33   : > { %1111 = shalt.err (!%p1108_p3)
}
  0x34   : > { %s1112_s7 = scalar_lea.vmem %s1361_s10, 2048  ;;  %p1120_p12 = scmp.lt.s32.totalorder %s1361_s10, %s1361_s10 }
  0x35   : > { %p1113_p5 = scmp.ne.s32.totalorder %s1361_s10, %s1112_s7  ;;  %p1121_p0 = scmp.lt.s32.totalorder %s1112_s7, %s1112_s7 }
  0x37   : > { %p1115_p7 = pnand %p1113_p5, %p1073_p13  ;;  %p1122_p2 = por %p1121_p0, %p1120_p12 }
  0x39   : > { %p1116_p9 = pneg %p1115_p7 }
  0x3b   : > { %p1123_p1 = pnand %p1122_p2, %p1116_p9 }
  0x3d   : > { %1126 = shalt.err (!%p1123_p1)
}
  0x3e   : > { %1013 = dma.hbm_to_vmem [thread:$0]  (!%p1357_p11), %s1600_s3, 2048, %s1361_s10, [#allocation6], %s1263_s19, %s1263_s19, %s1264_s20  }
  0x3f   : > { %s1416_s26 = sadd.s32 1, %s1259_s24   ;;  %s34_s8 = sadd.s32 1, %s1255_s23 }
  0x40   : > { %s31_s30 = ssub.s32 %s1259_s24, %s1416_s26  ;;  %p41_p13 = scmp.ne.s32.totalorder %s1255_s23, %s1251_s22 }
  0x41   : > { %p32_p6 = scmp.eq.s32.totalorder %s31_s30, 0  ;;  %p42_p10 = scmp.eq.s32.totalorder %s1259_s24, 0 }
  0x42   : > { %p1611_p3 = scmp.eq.s32.totalorder %s1327_s25, 1  ;;  %p1027_p7 = scmp.lt.s32.totalorder %s1259_s24, 2 }
  0x43   : > { %s1432_s11 = scalar_select %p32_p6, %s1255_s23, %s34_s8  }
  0x44   : > { %p1426_p5 = por %p1611_p3, %p41_p13  ;;  %p43_p9 = por %p42_p10, %p41_p13 }
  0x45   : > { %s239_s12 = sand.u32 1, %s1255_s23   ;;  %s991_s10 = smul.u32 192, %s1259_s24 }
  0x46   : > { %s1612_s9 = scalar_select %p1426_p5, 1, 0 }
  0x47   : > { %s990_s13 = smul.u32 12, %s239_s12  ;;  %p1436_p11 = pnand %p1027_p7, %p43_p9 }
  0x48   : > { %s1443_s15 = scalar_lea.hbm %s1597_s0, %s991_s10  ;;  %s240_s17 = scalar_lea.sflag [#allocation3], %s239_s12 }
  0x49   : > { %s243_s16 = scalar_lea.vmem [#allocation2], %s990_s13  ;;  %s1127_s18 = scalar_lea.hbm %s1443_s15, 192 }
  0x4a   : > { %s251_s7 = sshll.u32 %s243_s16, 4  ;;  %p1128_p12 = scmp.ne.s32.totalorder %s1443_s15, %s1127_s18  ;;  %s1445_s7 = int_to_ptr.vmem [resolvable:$true] %s251_s7 }
  0x4b   : > { %p1129_p0 = pneg %p1436_p11  ;;  %s1132_s10 = scalar_lea.hbm %s1597_s0, 384 }
  0x4c   : > { %p1133_p13 = scmp.lt.u32.totalorder %s1443_s15, %s1597_s0  ;;  %p1134_p6 = scmp.lt.u32.totalorder %s1132_s10, %s1127_s18 }
  0x4d   : > { %p1130_p2 = pnand %p1129_p0, %p1128_p12  ;;  %p1136_p3 = scmp.lt.u32.totalorder %s1127_s18, %s1443_s15 }
  0x4e   : > { %p1135_p10 = por %p1134_p6, %p1133_p13 }
  0x4f   : > { %p1131_p1 = pneg %p1130_p2 }
  0x50   : > { %p1137_p7 = por %p1136_p3, %p1135_p10 }
  0x52   : > { %p1138_p9 = pnand %p1137_p7, %p1131_p1 }
  0x54   : > { %1141 = shalt.err (!%p1138_p9)
}
  0x55   : > { %s1142_s12 = scalar_lea.vmem %s1445_s7, 192  ;;  %s1265_s13 = smov [#allocation2]  }
  0x56   : > { %p1143_p12 = scmp.ne.s32.totalorder %s1445_s7, %s1142_s12  ;;  %s1147_s16 = sshll.u32 %s1265_s13, 4  ;;  %s1148_s16 = int_to_ptr.vmem [resolvable:$false] %s1147_s16 }
  0x57   : > { %s1149_s8 = scalar_lea.vmem %s1148_s16, 384  ;;  %p1150_p4 = scmp.lt.s32.totalorder %s1445_s7, %s1148_s16 }
  0x58   : > { %p1145_p2 = pnand %p1143_p12, %p1129_p0  ;;  %p1151_p13 = scmp.lt.s32.totalorder %s1149_s8, %s1142_s12 }
  0x5a   : > { %p1146_p5 = pneg %p1145_p2  ;;  %p1152_p6 = por %p1151_p13, %p1150_p4 }
  0x5c   : > { %p1153_p10 = pnand %p1152_p6, %p1146_p5 }
  0x5e   : > { %1156 = shalt.err (!%p1153_p10)
}
  0x5f   : > { %1017 = dma.hbm_to_vmem [thread:$0]  (!%p1436_p11), %s1443_s15, 192, %s1445_s7, %s240_s17  }
  0x60   : > { %260 = sbr.rel (%p1346_p8) target bundleno = 589 (0x24d), region = 40  ;;  %s1475_s18 = sand.u32 (!%p1346_p8), 1, %s1251_s22  }
  0x61   : > { %s992_s30 = smul.u32 (!%p1346_p8), 12, %s1475_s18  ;;  %s263_s10 = scalar_lea.sflag (!%p1346_p8), [#allocation3], %s1475_s18 }
  0x62   : > { %p1614_p4 = scmp.ne.s32.totalorder (!%p1346_p8), %s1607_s27, 0 }
  0x63   : > { %s1479_s20 = scalar_lea.vmem (!%p1346_p8), [#allocation2], %s992_s30 }
  0x67   : > { %1230 = dma.done.wait (%p1614_p4), %s263_s10, 192  }
  0x68   : > { %1232 = vsyncadd (%p1614_p4), %s263_s10, 4294967104  ;;  %p1615_p5 = scmp.eq.s32.totalorder %s1327_s25, 0 }
  0x6a   : > { %1234 = dma.done.wait (%p1615_p5), [#allocation6], 8192   ;;  %p1616_p8 = pmov %p1615_p5 }
  0x6b   : > { %v1266_v0 = vmov 0.0|0.0   ;;  %vm1267_vm0 = vmmov 0   ;;  %v1268_v1 = vmov 0.0   ;;  %v353_v2 = vld [vmem:[#allocation5 + $0x80] sm:$0xff]  ;;  %v354_v3 = vld [vmem:[#allocation5 + $0x88] sm:$0xff]  ;;  %v355_v7 = vld [vmem:[#allocation5 + $0x90] sm:$0xff] }
  0x6c   : > { %1236 = vsyncadd (%p1616_p8), [#allocation6], 4294959104  ;;  %942 = vmatprep.subr.bf16.mxu1 %v1266_v0  ;;  %872 = vmatprep.mubr.msk.f32.mxu1 %vm1267_vm0, %v1268_v1  ;;  %v337_v4 = vld [vmem:[#allocation5] sm:$0xff]  ;;  %v910_v5 = vpack.c.bf16 %v354_v3, %v353_v2  ;;  %v338_v6 = vld [vmem:[#allocation5 + $0x8] sm:$0xff]  ;;  %vm311_vm1 = vcmask 1043456   ;;  %s299_s19 = scalar_lea.vmem [#allocation8], %s1475_s18 }
  0x6d   : > { %v356_v8 = vld [vmem:[#allocation5 + $0x98] sm:$0xff]  ;;  %v912_v9 = vpack.c.bf16 %v338_v6, %v337_v4  ;;  %v339_v11 = vld [vmem:[#allocation5 + $0x10] sm:$0xff]  ;;  %v369_v13 = vld [vmem:[#allocation5 + $0x100] sm:$0xff]  ;;  %s767_s15 = sshll.u32 %s1327_s25, 4  ;;  %s632_s7 = sshll.u32 %s299_s19, 4  ;;  %s633_s7 = int_to_ptr.vmem [resolvable:$true] %s632_s7 }
  0x6e   : > { %v914_v10 = vpack.c.bf16 %v356_v8, %v355_v7  ;;  %v340_v12 = vld [vmem:[#allocation5 + $0x18] sm:$0xff]  ;;  %911 = vmatprep.subr.bf16.mxu0 %v910_v5  ;;  %v370_v14 = vld [vmem:[#allocation5 + $0x108] sm:$0xff]  ;;  %v357_v15 = vld [vmem:[#allocation5 + $0xa0] sm:$0xff]  ;;  %s1524_s12 = scalar_lea.hbm %s1602_s5, %s767_s15  ;;  %s616_s13 = scalar_lea.sflag [#allocation4], %s1475_s18 }
  0x6f   : > { %v358_v16 = vld [vmem:[#allocation5 + $0xa8] sm:$0xff]  ;;  %913 = vmatpush3.bf16.msra.mxu0 %v912_v9  ;;  %v916_v17 = vpack.c.bf16 %v340_v12, %v339_v11  ;;  %v943_v18 = vpack.c.bf16 %v370_v14, %v369_v13  ;;  %v371_v19 = vld [vmem:[#allocation5 + $0x110] sm:$0xff]  ;;  %v341_v21 = vld [vmem:[#allocation5 + $0x20] sm:$0xff]  ;;  %s1157_s16 = scalar_lea.vmem %s633_s7, 16  ;;  %p1617_p0 = scmp.ne.s32.totalorder %s1612_s9, 0 }
  0x70   : > { %915 = vmatprep.subr.bf16.mxu0 %v914_v10  ;;  %v918_v20 = vpack.c.bf16 %v358_v16, %v357_v15  ;;  %v342_v22 = vld [vmem:[#allocation5 + $0x28] sm:$0xff]  ;;  %v372_v23 = vld [vmem:[#allocation5 + $0x118] sm:$0xff]  ;;  %v359_v25 = vld [vmem:[#allocation5 + $0xb0] sm:$0xff]  ;;  %p1158_p11 = scmp.ne.s32.totalorder %s633_s7, %s1157_s16  ;;  %s1269_s8 = smov [#allocation8]  }
  0x71   : > { %944 = vmatpush3.bf16.msra.mxu1 %v943_v18  ;;  %v946_v24 = vpack.c.bf16 %v372_v23, %v371_v19  ;;  %v360_v26 = vld [vmem:[#allocation5 + $0xb8] sm:$0xff]  ;;  %v373_v27 = vld [vmem:[#allocation5 + $0x120] sm:$0xff]  ;;  %v374_v28 = vld [vmem:[#allocation5 + $0x128] sm:$0xff]  ;;  %v920_v29 = vpack.c.bf16 %v342_v22, %v341_v21  ;;  %s1161_s30 = sshll.u32 %s1269_s8, 4  ;;  %s1162_s30 = int_to_ptr.vmem [resolvable:$false] %s1161_s30 }
  0x72   : > { %945 = vmatprep.subr.bf16.mxu1 %v1266_v0  ;;  %v922_v30 = vpack.c.bf16 %v360_v26, %v359_v25  ;;  %v343_v31 = vld [vmem:[#allocation5 + $0x30] sm:$0xff]  ;;  %v344_v32 = vld [vmem:[#allocation5 + $0x38] sm:$0xff]  ;;  %v949_v33 = vpack.c.bf16 %v374_v28, %v373_v27  ;;  %v361_v34 = vld [vmem:[#allocation5 + $0xc0] sm:$0xff]  ;;  %p1159_p1 = pnand %p1158_p11, %p1617_p0  ;;  %s1163_s10 = scalar_lea.vmem %s1162_s30, 32 }
  0x73   : > { %917 = vmatpush3.bf16.msra.mxu0 %v916_v17  ;;  %v362_v35 = vld [vmem:[#allocation5 + $0xc8] sm:$0xff]  ;;  %v375_v36 = vld [vmem:[#allocation5 + $0x130] sm:$0xff]  ;;  %v376_v37 = vld [vmem:[#allocation5 + $0x138] sm:$0xff]  ;;  %v924_v38 = vpack.c.bf16 %v344_v32, %v343_v31  ;;  %p1164_p7 = scmp.lt.s32.totalorder %s633_s7, %s1162_s30  ;;  %p1165_p9 = scmp.lt.s32.totalorder %s1163_s10, %s1157_s16 }
  0x74   : > { %919 = vmatprep.subr.bf16.mxu0 %v918_v20  ;;  %v926_v39 = vpack.c.bf16 %v362_v35, %v361_v34  ;;  %v345_v40 = vld [vmem:[#allocation5 + $0x40] sm:$0xff]  ;;  %v346_v41 = vld [vmem:[#allocation5 + $0x48] sm:$0xff]  ;;  %v952_v42 = vpack.c.bf16 %v376_v37, %v375_v36  ;;  %v363_v43 = vld [vmem:[#allocation5 + $0xd0] sm:$0xff]  ;;  %p1160_p3 = pneg %p1159_p1 }
  0x75   : > { %947 = vmatpush3.bf16.msra.mxu1 %v946_v24  ;;  %v364_v44 = vld [vmem:[#allocation5 + $0xd8] sm:$0xff]  ;;  %v377_v45 = vld [vmem:[#allocation5 + $0x140] sm:$0xff]  ;;  %v378_v46 = vld [vmem:[#allocation5 + $0x148] sm:$0xff]  ;;  %v928_v48 = vpack.c.bf16 %v346_v41, %v345_v40  ;;  %p1166_p12 = por %p1165_p9, %p1164_p7 }
  0x76   : > { %948 = vmatprep.subr.bf16.mxu1 %v1266_v0  ;;  %v306_v47 = vld [vmem:[%s1479_s20] sm:$0xff]  ;;  %v307_v51 = vld [vmem:[%s1479_s20 + $0x8] sm:$0xf]  ;;  %v930_v52 = vpack.c.bf16 %v364_v44, %v363_v43  ;;  %v955_v57 = vpack.c.bf16 %v378_v46, %v377_v45  ;;  %v365_v58 = vld [vmem:[#allocation5 + $0xe0] sm:$0xff] }
  0x77   : > { %921 = vmatpush3.bf16.msra.mxu0 %v920_v29  ;;  %v309_v49 = vcombine.high %v306_v47, %v306_v47  ;;  %v312_v50 = vsel %vm311_vm1, %v306_v47, 0.0  ;;  %v347_v53 = vld [vmem:[#allocation5 + $0x50] sm:$0xff]  ;;  %v348_v54 = vld [vmem:[#allocation5 + $0x58] sm:$0xff]  ;;  %v326_v56 = vsel %vm311_vm1, %v307_v51, 0.0  ;;  %v366_v59 = vld [vmem:[#allocation5 + $0xe8] sm:$0xff]  ;;  %p1167_p2 = pnand %p1166_p12, %p1160_p3 }
  0x78   : > { %923 = vmatprep.subr.bf16.mxu0 %v922_v30  ;;  %v313_v55 = vrot.slane %v312_v50, 4  ;;  %v327_v61 = vrot.slane %v326_v56, 4  ;;  %v379_v62 = vld [vmem:[#allocation5 + $0x150] sm:$0xff]  ;;  %v380_v63 = vld [vmem:[#allocation5 + $0x158] sm:$0xff]  ;;  %v932_v4 = vpack.c.bf16 %v348_v54, %v347_v53  ;;  %v934_v6 = vpack.c.bf16 %v366_v59, %v365_v58  ;;  %v349_v7 = vld [vmem:[#allocation5 + $0x60] sm:$0xff] }
  0x79   : > { %950 = vmatpush3.bf16.msra.mxu1 %v949_v33  ;;  %v319_v60 = vsel %vm311_vm1, %v309_v49, 0.0  ;;  %v350_v8 = vld [vmem:[#allocation5 + $0x68] sm:$0xff]  ;;  %v958_v11 = vpack.c.bf16 %v380_v63, %v379_v62  ;;  %v367_v12 = vld [vmem:[#allocation5 + $0xf0] sm:$0xff]  ;;  %v368_v13 = vld [vmem:[#allocation5 + $0xf8] sm:$0xff] }
  0x7a   : > { %951 = vmatprep.subr.bf16.mxu1 %v1266_v0  ;;  %v320_v2 = vrot.slane %v319_v60, 4  ;;  %v314_v3 = vadd.f32 %v313_v55, %v312_v50  ;;  %v328_v5 = vadd.f32 %v327_v61, %v326_v56  ;;  %v381_v15 = vld [vmem:[#allocation5 + $0x160] sm:$0xff]  ;;  %v382_v16 = vld [vmem:[#allocation5 + $0x168] sm:$0xff]  ;;  %v936_v19 = vpack.c.bf16 %v350_v8, %v349_v7  ;;  %v351_v22 = vld [vmem:[#allocation5 + $0x70] sm:$0xff] }
  0x7b   : > { %925 = vmatpush3.bf16.msra.mxu0 %v924_v38  ;;  %v938_v21 = vpack.c.bf16 %v368_v13, %v367_v12  ;;  %v352_v23 = vld [vmem:[#allocation5 + $0x78] sm:$0xff]  ;;  %v961_v26 = vpack.c.bf16 %v382_v16, %v381_v15  ;;  %v383_v30 = vld [vmem:[#allocation5 + $0x170] sm:$0xff]  ;;  %v526_v35 = vld [vmem:[#allocation7] sm:$0xff] }
  0x7c   : > { %927 = vmatprep.subr.bf16.mxu0 %v926_v39  ;;  %v321_v9 = vadd.f32 %v320_v2, %v319_v60  ;;  %v315_v10 = vrot.slane %v314_v3, 2  ;;  %v329_v14 = vrot.slane %v328_v5, 2  ;;  %v384_v31 = vld [vmem:[#allocation5 + $0x178] sm:$0xff]  ;;  %v940_v32 = vpack.c.bf16 %v352_v23, %v351_v22  ;;  %v527_v36 = vld [vmem:[#allocation7 + $0x8] sm:$0xff]  ;;  %v530_v45 = vld [vmem:[#allocation7 + $0x20] sm:$0xff] }
  0x7d   : > { %953 = vmatpush3.bf16.msra.mxu1 %v952_v42  ;;  %v964_v37 = vpack.c.bf16 %v384_v31, %v383_v30  ;;  %v967_v40 = vpack.c.bf16 %v527_v36, %v526_v35  ;;  %v528_v42 = vld [vmem:[#allocation7 + $0x10] sm:$0xff]  ;;  %v529_v43 = vld [vmem:[#allocation7 + $0x18] sm:$0xff]  ;;  %v531_v46 = vld [vmem:[#allocation7 + $0x28] sm:$0xff] }
  0x7e   : > { %954 = vmatprep.subr.bf16.mxu1 %v1266_v0  ;;  %v322_v17 = vrot.slane %v321_v9, 2  ;;  %v316_v18 = vadd.f32 %v315_v10, %v314_v3  ;;  %v330_v20 = vadd.f32 %v329_v14, %v328_v5  ;;  %v970_v44 = vpack.c.bf16 %v529_v43, %v528_v42  ;;  %v533_v49 = vld [vmem:[#allocation7 + $0x38] sm:$0xff]  ;;  %v534_v51 = vld [vmem:[#allocation7 + $0x40] sm:$0xff]  ;;  %v540_v59 = vld [vmem:[#allocation7 + $0x70] sm:$0xff] }
  0x7f   : > { %929 = vmatpush3.bf16.msra.mxu0 %v928_v48  ;;  %v973_v47 = vpack.c.bf16 %v531_v46, %v530_v45  ;;  %v532_v48 = vld [vmem:[#allocation7 + $0x30] sm:$0xff]  ;;  %v537_v54 = vld [vmem:[#allocation7 + $0x58] sm:$0xff]  ;;  %v538_v56 = vld [vmem:[#allocation7 + $0x60] sm:$0xff] }
  0x80   : > { %931 = vmatprep.subr.bf16.mxu0 %v930_v52  ;;  %v323_v24 = vadd.f32 %v322_v17, %v321_v9  ;;  %v317_v25 = vrot.slane %v316_v18, 1  ;;  %v331_v27 = vrot.slane %v330_v20, 1  ;;  %v976_v50 = vpack.c.bf16 %v533_v49, %v532_v48  ;;  %v535_v52 = vld [vmem:[#allocation7 + $0x48] sm:$0xff]  ;;  %v541_v60 = vld [vmem:[#allocation7 + $0x78] sm:$0xff] }
  0x81   : > { %956 = vmatpush3.bf16.msra.mxu1 %v955_v57  ;;  %v979_v53 = vpack.c.bf16 %v535_v52, %v534_v51  ;;  %v539_v57 = vld [vmem:[#allocation7 + $0x68] sm:$0xff]  ;;  %v988_v61 = vpack.c.bf16 %v541_v60, %v540_v59 }
  0x82   : > { %957 = vmatprep.subr.bf16.mxu1 %v1266_v0  ;;  %v324_v28 = vrot.slane %v323_v24, 1  ;;  %v318_v29 = vadd.f32 %v317_v25, %v316_v18  ;;  %v332_v34 = vadd.f32 %v331_v27, %v330_v20  ;;  %v985_v58 = vpack.c.bf16 %v539_v57, %v538_v56  ;;  %v385_v2 = vld [vmem:[%s1599_s2] sm:$0x1] }
  0x83   : > { %933 = vmatpush3.bf16.msra.mxu0 %v932_v4 }
  0x84   : > { %935 = vmatprep.subr.bf16.mxu0 %v934_v6  ;;  %v325_v33 = vadd.f32 %v324_v28, %v323_v24  ;;  %v334_v39 = vmul.f32 0.25, %v318_v29  ;;  %v336_v41 = vmul.f32 0.25, %v332_v34 }
  0x85   : > { %959 = vmatpush3.bf16.msra.mxu1 %v958_v11 }
  0x86   : > { %960 = vmatprep.subr.bf16.mxu1 %v1266_v0  ;;  %v335_v38 = vmul.f32 0.25, %v325_v33 }
  0x87   : > { %937 = vmatpush3.bf16.msra.mxu0 %v936_v19 }
  0x88   : > { %939 = vmatprep.subr.bf16.mxu0 %v938_v21  ;;  %450 = vmatprep.mubr.f32.mxu0 %v335_v38 }
  0x89   : > { %962 = vmatpush3.bf16.msra.mxu1 %v961_v26 }
  0x8a   : > { %963 = vmatprep.subr.bf16.mxu1 %v1266_v0 }
  0x8b   : > { %941 = vmatpush3.bf16.msra.mxu0 %v940_v32 }
  0x8c   : > { %966 = vmatprep.subr.bf16.mxu0 %v1266_v0 }
  0x8d   : > { %965 = vmatpush3.bf16.msra.mxu1 %v964_v37 }
  0x8e   : > { %451 = vmatmul.mubr.f32.vlgmr.msra.gmra.mrb[0].mxu0 %v334_v39 }
  0x8f   : > { %968 = vmatpush3.bf16.msra.mxu0 %v967_v40  ;;  %907 = vmatprep.mubr.msk.f32.mxu0 %vm1267_vm0, %v1268_v1  ;;  %v536_v1 = vld [vmem:[#allocation7 + $0x50] sm:$0xff] }
  0x90   : > { %873 = vmatmul.mubr.f32.vlgmr.msra.gmra.mrb[0].mxu1 %v336_v41  ;;  %969 = vmatprep.subr.bf16.mxu0 %v1266_v0  ;;  %v982_v55 = vpack.c.bf16 %v537_v54, %v536_v1 }
  0x93   : > { %971 = vmatpush3.bf16.msra.mxu0 %v970_v44 }
  0x94   : > { %972 = vmatprep.subr.bf16.mxu0 %v1266_v0 }
  0x97   : > { %974 = vmatpush3.bf16.msra.mxu0 %v973_v47 }
  0x98   : > { %975 = vmatprep.subr.bf16.mxu0 %v1266_v0 }
  0x9b   : > { %977 = vmatpush3.bf16.msra.mxu0 %v976_v50 }
  0x9c   : > { %978 = vmatprep.subr.bf16.mxu0 %v1266_v0 }
  0x9f   : > { %980 = vmatpush3.bf16.msra.mxu0 %v979_v53 }
  0xa0   : > { %981 = vmatprep.subr.bf16.mxu0 %v1266_v0 }
  0xa3   : > { %983 = vmatpush3.bf16.msra.mxu0 %v982_v55 }
  0xa4   : > { %984 = vmatprep.subr.bf16.mxu0 %v1266_v0 }
  0xa7   : > { %986 = vmatpush3.bf16.msra.mxu0 %v985_v58 }
  0xa8   : > { %987 = vmatprep.subr.bf16.mxu0 %v1266_v0 }
  0xab   : > { %989 = vmatpush3.bf16.msra.mxu0 %v988_v61 }
 0x161   : > { %v803_v62 = vpop.f32.mrb[0].mxu0 }
 0x162   : > { %v804_v63 = vpop.f32.mrb[1].mxu0 }
 0x163   : > { %v805_v3 = vadd.f32 %v804_v63, %v803_v62  ;;  %v522_v4 = vpop.f32.mrb[0].mxu1 }
 0x164   : > { %v874_v5 = vpop.f32.mrb[1].mxu1 }
 0x165   : > { %v453_v6 = vadd.f32 %v805_v3, %v385_v2 }
 0x167   : > { %v523_v7 = vadd.f32 %v522_v4, %v453_v6 }
 0x169   : > { %613 = vst [vmem:[%s299_s19] sm:$0x1] %v523_v7  ;;  %908 = vmatmul.mubr.f32.vlgmr.msra.gmra.mrb[2].mxu0 %v523_v7 }
 0x16a   : > { %1170 = shalt.err (!%p1167_p2)
}
 0x16b   : > { %s1171_s20 = scalar_lea.hbm %s1524_s12, 16  ;;  %s1175_s19 = scalar_lea.hbm %s1602_s5, 32 }
 0x16c   : > { %p1172_p13 = scmp.ne.s32.totalorder %s1524_s12, %s1171_s20  ;;  %p1176_p4 = scmp.lt.u32.totalorder %s1524_s12, %s1602_s5 }
 0x16d   : > { %p1177_p5 = scmp.lt.u32.totalorder %s1175_s19, %s1171_s20  ;;  %p1179_p11 = scmp.lt.u32.totalorder %s1171_s20, %s1524_s12 }
 0x16e   : > { %p1173_p6 = pnand %p1172_p13, %p1617_p0 }
 0x16f   : > { %p1178_p8 = por %p1177_p5, %p1176_p4 }
 0x170   : > { %p1174_p10 = pneg %p1173_p6 }
 0x171   : > { %p1180_p1 = por %p1179_p11, %p1178_p8 }
 0x173   : > { %p1181_p3 = pnand %p1180_p1, %p1174_p10 }
 0x175   : > { %1184 = shalt.err (!%p1181_p3)
}
 0x176   : > { %1003 = dma.vmem_to_hbm [thread:$0]  (%p1617_p0), %s633_s7, 16, %s1524_s12, %s616_s13   ;;  %v542_v0 = vld [vmem:[%s1601_s4] sm:$0x1] }
 0x177   : > { %s305_s30 = scalar_lea.vmem [#allocation9], %s1475_s18  ;;  %s1553_s29 = scalar_lea.hbm %s1603_s6, %s767_s15 }
 0x178   : > { %s645_s10 = sshll.u32 %s305_s30, 4  ;;  %s620_s7 = scalar_lea.sflag [#allocation10], %s1475_s18  ;;  %s1555_s10 = int_to_ptr.vmem [resolvable:$true] %s645_s10 }
 0x179   : > { %s1185_s12 = scalar_lea.vmem %s1555_s10, 16  ;;  %s1270_s13 = smov [#allocation9]  }
 0x17a   : > { %p1186_p7 = scmp.ne.s32.totalorder %s1555_s10, %s1185_s12  ;;  %s1189_s19 = sshll.u32 %s1270_s13, 4  ;;  %s1190_s19 = int_to_ptr.vmem [resolvable:$false] %s1189_s19 }
 0x17b   : > { %s1191_s25 = scalar_lea.vmem %s1190_s19, 32  ;;  %p1192_p2 = scmp.lt.s32.totalorder %s1555_s10, %s1190_s19 }
 0x17c   : > { %p1187_p9 = pnand %p1186_p7, %p1617_p0  ;;  %p1193_p13 = scmp.lt.s32.totalorder %s1191_s25, %s1185_s12 }
 0x17e   : > { %p1188_p12 = pneg %p1187_p9  ;;  %p1194_p6 = por %p1193_p13, %p1192_p2 }
 0x180   : > { %p1195_p10 = pnand %p1194_p6, %p1188_p12 }
 0x23c   : > { %v609_v8 = vpop.f32.mrb[2].mxu0 }
 0x23d   : > { %v610_v9 = vadd.f32 %v609_v8, %v542_v0  ;;  %v909_v10 = vpop.f32.mrb[3].mxu0 }
 0x23f   : > { %614 = vst [vmem:[%s305_s30] sm:$0x1] %v610_v9 }
 0x240   : > { %1198 = shalt.err (!%p1195_p10)
}
 0x241   : > { %s1199_s18 = scalar_lea.hbm %s1553_s29, 16  ;;  %s1203_s14 = scalar_lea.hbm %s1603_s6, 32 }
 0x242   : > { %p1200_p4 = scmp.ne.s32.totalorder %s1553_s29, %s1199_s18  ;;  %p1204_p11 = scmp.lt.u32.totalorder %s1553_s29, %s1603_s6 }
 0x243   : > { %p1205_p1 = scmp.lt.u32.totalorder %s1203_s14, %s1199_s18  ;;  %p1207_p7 = scmp.lt.u32.totalorder %s1199_s18, %s1553_s29 }
 0x244   : > { %p1201_p5 = pnand %p1200_p4, %p1617_p0 }
 0x245   : > { %p1206_p3 = por %p1205_p1, %p1204_p11 }
 0x246   : > { %p1202_p8 = pneg %p1201_p5 }
 0x247   : > { %p1208_p9 = por %p1207_p7, %p1206_p3 }
 0x249   : > { %p1209_p12 = pnand %p1208_p9, %p1202_p8 }
 0x24b   : > { %1212 = shalt.err (!%p1209_p12)
}
 0x24c   : > { %1004 = dma.vmem_to_hbm [thread:$0]  (%p1617_p0), %s1555_s10, 16, %s1553_s29, %s620_s7  }
 0x24d PF: > { %s657_s30 = sand.u32 1, %s1247_s21   ;;  %p1618_p2 = scmp.ne.s32.totalorder %s1608_s28, 0 }
 0x24e   : > { %p1619_p13 = scmp.ge.s32.totalorder %s1259_s24, 2  ;;  %s658_s20 = scalar_lea.sflag [#allocation4], %s657_s30 }
 0x250   : > { %p1019_p6 = pnand %p1619_p13, %p1618_p2 }
 0x252   : > { %1238 = dma.done.wait (!%p1019_p6), %s658_s20, 16  }
 0x253   : > { %1240 = vsyncadd (!%p1019_p6), %s658_s20, 4294967280  ;;  %s666_s27 = scalar_lea.sflag [#allocation10], %s657_s30 }
 0x254   : > { %1242 = dma.done.wait (!%p1019_p6), %s666_s27, 16  }
 0x255   : > { %1244 = vsyncadd (!%p1019_p6), %s666_s27, 4294967280  ;;  %p24_p0 = scmp.ge.s32.totalorder %s1416_s26, 4   ;;  %s1620_s21 = smov %s1251_s22 }
 0x256   : > { %s1621_s22 = smov %s1255_s23  ;;  %s1622_s23 = smov %s1432_s11 }
 0x257   : > { %s1623_s24 = smov %s1416_s26  ;;  %26 = sbr.rel (!%p24_p0) target bundleno = 8 (0x8), region = 110 }
 0x25e   :  { %670 = vsyncpa [#allocation3], 1 }
 0x25f   :  { %672 = vsyncpa [#allocation3 + $0x1], 1 }
 0x260   :  { %673 = vsyncpa [#allocation6], 1 }
 0x261   :  { %674 = vsyncpa [#allocation4], 1 }
 0x262   :  { %676 = vsyncpa [#allocation4 + $0x1], 1 }
 0x263   :  { %677 = vsyncpa [#allocation10], 1 }
 0x264   :  { %679 = vsyncpa [#allocation10 + $0x1], 1 }

</bundles_post_ra>
